<compile_context>
chip_gen: v6e
topology: v6e:2x2x1
jax: 0.10.0
libtpu: 0.0.40
codegen_flags: <defaults>
</compile_context>

<pallas_src>
import jax
import jax.numpy as jnp
import numpy as np
from jax.experimental import pallas as pl
from jax.experimental.pallas import tpu as pltpu


# ----------------------------------------------------------------------------
# Helpers
# ----------------------------------------------------------------------------
def _round_up(x, m):
    return ((x + m - 1) // m) * m


def _pick_tile_h(H, bytes_per_row, max_block_bytes, prefer_min_tiles):
    """Largest tile_h that divides H, is a multiple of 8 (or == H), fits the
    byte budget and (when possible) keeps >= prefer_min_tiles grid steps so
    both v7x TensorCores have work even at batch 1."""
    if H % 8 != 0:
        return H  # odd feature-map height: single full block (rare edge case)
    candidates = [t for t in range(8, H + 1, 8) if H % t == 0]
    fitting = [t for t in candidates if t * bytes_per_row <= max_block_bytes]
    if not fitting:
        return 8
    multi = [t for t in fitting if H // t >= prefer_min_tiles]
    return max(multi) if multi else max(fitting)


def _vmem_limit(needed_bytes):
    # Never request v7x's full 64 MiB/TC VMEM; 48 MiB leaves headroom for
    # compiler temporaries and double-buffer padding.
    return int(min(max(needed_bytes, 16 << 20), 48 << 20))


# ----------------------------------------------------------------------------
# Kernels
# ----------------------------------------------------------------------------
def make_stats_kernel(W, inv_w, inv_h):
    def stats_kernel(x_ref, w1t_ref, p1_ref, wht_ref, wwt_ref, bhw_ref,
                     ah_ref, aw_ref, pw_acc):
        h_idx = pl.program_id(1)
        x = x_ref[...]                                     # (tile_h, W, C)

        # AdaptiveAvgPool2d((None,1)) == mean over W (per-tile rows);
        # ((1,None)) == mean over H (accumulated across tiles).  f32 accum.
        pooled_h = jnp.sum(x, axis=1, dtype=jnp.float32) * inv_w   # (tile_h, C)
        col_sum = jnp.sum(x, axis=0, dtype=jnp.float32)            # (W, C)

        @pl.when(h_idx == 0)
        def _():
            pw_acc[...] = jnp.zeros_like(pw_acc)
        pw_acc[...] += col_sum

        w1t = w1t_ref[...]                  # (C, mip)
        b1 = p1_ref[0:1, :]                 # (1, mip)
        s1 = p1_ref[1:2, :]                 # folded BN scale
        t1 = p1_ref[2:3, :]                 # folded BN shift

        def conv1_bn_hswish(p):
            y = jnp.dot(p, w1t, preferred_element_type=jnp.float32) + b1
            y = y * s1 + t1
            # h_swish: x * relu6(x + 3) / 6
            return y * (jnp.clip(y + 3.0, 0.0, 6.0) * (1.0 / 6.0))

        # a_h rows for this tile (fully local to the tile).
        yh = conv1_bn_hswish(pooled_h)                              # (tile_h, mip)
        bh = bhw_ref[0:1, :]                                        # (1, C)
        ah_ref[...] = jax.nn.sigmoid(
            jnp.dot(yh, wht_ref[...], preferred_element_type=jnp.float32) + bh
        ).astype(ah_ref.dtype)

        # a_w needs the full H reduction -> finalize on the last H tile.
        @pl.when(h_idx == pl.num_programs(1) - 1)
        def _():
            pooled_w = pw_acc[...] * inv_h                          # (W, C)
            yw = conv1_bn_hswish(pooled_w)                          # (W, mip)
            bw = bhw_ref[1:2, :]                                    # (1, C)
            aw_ref[...] = jax.nn.sigmoid(
                jnp.dot(yw, wwt_ref[...], preferred_element_type=jnp.float32) + bw
            ).astype(aw_ref.dtype)

    return stats_kernel


def make_gating_kernel_flat(W, C):
    def gating_kernel(x_ref, ah_ref, aw_ref, o_ref):
        x = x_ref[...]                       # (tile_h, W*C) native dtype
        a_h = ah_ref[...]                    # (tile_h, C)   f32
        a_w = aw_ref[...]                    # (1, W*C)      f32
        th = a_h.shape[0]
        # a_h broadcast across W inside the lane dim (index = w*C + c).
        a_hb = jnp.broadcast_to(a_h[:, None, :], (th, W, C)).reshape(th, W * C)
        # f32 math (a_h/a_w are f32, x promotes), store in native dtype.
        o_ref[...] = (x * a_hb * a_w).astype(o_ref.dtype)
    return gating_kernel


def gating_kernel_3d(x_ref, ah_ref, aw_ref, o_ref):
    x = x_ref[...]                           # (tile_h, W, C) native dtype
    a_h = ah_ref[...]                        # (tile_h, C)    f32
    a_w = aw_ref[...]                        # (W, C)         f32
    o_ref[...] = (x * a_h[:, None, :] * a_w[None, :, :]).astype(o_ref.dtype)


# ----------------------------------------------------------------------------
# Wrapper
# ----------------------------------------------------------------------------
def ca_forward_nhwc(x_nhwc, params):
    """x_nhwc: (B, H, W, C) activations (channels-last, lane-dense)."""
    B, H, W, C = x_nhwc.shape
    dtype = x_nhwc.dtype
    itemsize = jnp.dtype(dtype).itemsize

    w1 = params["w1"]                               # (mip, C) PyTorch (out, in)
    mip = w1.shape[0]
    w1t = jnp.transpose(w1)                         # (C, mip)
    p1 = jnp.stack([params["b1"], params["bn_scale"], params["bn_shift"]],
                   axis=0)                          # (3, mip)
    wht = jnp.transpose(params["wh"])               # (mip, C)
    wwt = jnp.transpose(params["ww"])               # (mip, C)
    bhw = jnp.stack([params["bh"], params["bw"]], axis=0)   # (2, C)

    def const_spec(shape):
        nd = len(shape)
        return pl.BlockSpec(shape, lambda b, h, _nd=nd: (0,) * _nd)

    # ---------------- pass 1: stats (pooling + convs + sigmoid) --------------
    stats_row_bytes = _round_up(W, 8) * _round_up(C, 128) * itemsize
    th_s = _pick_tile_h(H, stats_row_bytes, max_block_bytes=4 << 20,
                        prefer_min_tiles=1)
    n_hs = H // th_s if H % th_s == 0 else 1

    a_h, a_w = pl.pallas_call(
        make_stats_kernel(W, 1.0 / float(W), 1.0 / float(H)),
        out_shape=(jax.ShapeDtypeStruct((B, H, C), jnp.float32),
                   jax.ShapeDtypeStruct((B, W, C), jnp.float32)),
        grid_spec=pltpu.PrefetchScalarGridSpec(
            num_scalar_prefetch=0,
            grid=(B, n_hs),
            in_specs=[
                pl.BlockSpec((pl.Squeezed(), th_s, W, C), lambda b, h: (b, h, 0, 0)),
                const_spec((C, mip)),
                const_spec((3, mip)),
                const_spec((mip, C)),
                const_spec((mip, C)),
                const_spec((2, C)),
            ],
            out_specs=[
                pl.BlockSpec((pl.Squeezed(), th_s, C), lambda b, h: (b, h, 0)),
                pl.BlockSpec((pl.Squeezed(), W, C), lambda b, h: (b, 0, 0)),
            ],
            scratch_shapes=[pltpu.VMEM((W, C), jnp.float32)],
        ),
        compiler_params=pltpu.CompilerParams(
            dimension_semantics=("parallel", "arbitrary"),
            vmem_limit_bytes=_vmem_limit(4 * th_s * stats_row_bytes + (8 << 20))),
    )(x_nhwc, w1t, p1, wht, wwt, bhw)

    # ---------------- pass 2: gating out = x * a_h * a_w ---------------------
    if C % 128 == 0:
        # C already lane-dense: keep the 3-D layout.
        gate_row_bytes = _round_up(W, 8) * C * itemsize
        th_g = _pick_tile_h(H, gate_row_bytes, max_block_bytes=4 << 20,
                            prefer_min_tiles=2)
        n_hg = H // th_g if H % th_g == 0 else 1
        out = pl.pallas_call(
            gating_kernel_3d,
            out_shape=jax.ShapeDtypeStruct((B, H, W, C), dtype),
            grid_spec=pltpu.PrefetchScalarGridSpec(
                num_scalar_prefetch=0,
                grid=(B, n_hg),
                in_specs=[
                    pl.BlockSpec((pl.Squeezed(), th_g, W, C), lambda b, h: (b, h, 0, 0)),
                    pl.BlockSpec((pl.Squeezed(), th_g, C), lambda b, h: (b, h, 0)),
                    pl.BlockSpec((pl.Squeezed(), W, C), lambda b, h: (b, 0, 0)),
                ],
                out_specs=pl.BlockSpec((pl.Squeezed(), th_g, W, C),
                                       lambda b, h: (b, h, 0, 0)),
            ),
            compiler_params=pltpu.CompilerParams(
                dimension_semantics=("parallel", "parallel"),
                vmem_limit_bytes=_vmem_limit(8 * th_g * gate_row_bytes + (8 << 20))),
        )(x_nhwc, a_h, a_w)
        return out

    # C < 128 (or not a multiple of 128): flatten (W, C) into one lane-dense
    # axis so stores are (mostly) unmasked and VMEM is not lane-padded.
    WC = W * C
    gate_row_bytes = _round_up(WC, 128) * itemsize
    th_g = _pick_tile_h(H, gate_row_bytes, max_block_bytes=4 << 20,
                        prefer_min_tiles=2)
    n_hg = H // th_g if H % th_g == 0 else 1

    x_flat = x_nhwc.reshape(B, H, WC)             # contiguous reshape (free)
    a_w_flat = a_w.reshape(B, 1, WC)

    out_flat = pl.pallas_call(
        make_gating_kernel_flat(W, C),
        out_shape=jax.ShapeDtypeStruct((B, H, WC), dtype),
        grid_spec=pltpu.PrefetchScalarGridSpec(
            num_scalar_prefetch=0,
            grid=(B, n_hg),
            in_specs=[
                pl.BlockSpec((pl.Squeezed(), th_g, WC), lambda b, h: (b, h, 0)),
                pl.BlockSpec((pl.Squeezed(), th_g, C), lambda b, h: (b, h, 0)),
                pl.BlockSpec((pl.Squeezed(), 1, WC), lambda b, h: (b, 0, 0)),
            ],
            out_specs=pl.BlockSpec((pl.Squeezed(), th_g, WC),
                                   lambda b, h: (b, h, 0)),
        ),
        compiler_params=pltpu.CompilerParams(
            dimension_semantics=("parallel", "parallel"),
            vmem_limit_bytes=_vmem_limit(8 * th_g * gate_row_bytes + (8 << 20))),
    )(x_flat, a_h, a_w_flat)
    return out_flat.reshape(B, H, W, C)


def ca_forward(x, params):
    """x: (B, C, H, W), same interface as the PyTorch module.

    In a real channels-last pipeline call `ca_forward_nhwc` directly and skip
    these wrapper transposes (they exist only to match NCHW semantics)."""
    x_nhwc = jnp.transpose(x, (0, 2, 3, 1))
    out_nhwc = ca_forward_nhwc(x_nhwc, params)
    return jnp.transpose(out_nhwc, (0, 3, 1, 2))


# ----------------------------------------------------------------------------
# Pure-JAX reference (NCHW, mirrors the PyTorch forward, BN in eval mode)
# ----------------------------------------------------------------------------
def ca_reference(x, params):
    B, C, H, W = x.shape
    x_h = jnp.mean(x, axis=3)                       # (B, C, H)
    x_w = jnp.mean(x, axis=2)                       # (B, C, W)
    y = jnp.concatenate([x_h, x_w], axis=2)         # (B, C, H+W)
    y = jnp.einsum("mc,bcl->bml", params["w1"], y) + params["b1"][None, :, None]
    y = y * params["bn_scale"][None, :, None] + params["bn_shift"][None, :, None]
    y = y * (jnp.clip(y + 3.0, 0.0, 6.0) / 6.0)
    yh, yw = y[:, :, :H], y[:, :, H:]
    a_h = jax.nn.sigmoid(jnp.einsum("cm,bml->bcl", params["wh"], yh)
                         + params["bh"][None, :, None])   # (B, C, H)
    a_w = jax.nn.sigmoid(jnp.einsum("cm,bml->bcl", params["ww"], yw)
                         + params["bw"][None, :, None])   # (B, C, W)
    return x * a_h[:, :, :, None] * a_w[:, :, None, :]


def init_params(key, C, reduction=32):
    mip = max(8, C // reduction)
    ks = jax.random.split(key, 8)
    w1 = jax.random.normal(ks[0], (mip, C), jnp.float32) * 0.2
    b1 = jax.random.normal(ks[1], (mip,), jnp.float32) * 0.1
    wh = jax.random.normal(ks[2], (C, mip), jnp.float32) * 0.2
    bh = jax.random.normal(ks[3], (C,), jnp.float32) * 0.1
    ww = jax.random.normal(ks[4], (C, mip), jnp.float32) * 0.2
    bw = jax.random.normal(ks[5], (C,), jnp.float32) * 0.1
    # Non-trivial BN running stats / affine params, folded for inference.
    gamma = 1.0 + 0.1 * jax.random.normal(ks[6], (mip,), jnp.float32)
    beta = 0.1 * jax.random.normal(ks[7], (mip,), jnp.float32)
    running_mean = jnp.linspace(-0.2, 0.2, mip, dtype=jnp.float32)
    running_var = jnp.linspace(0.8, 1.2, mip, dtype=jnp.float32)
    eps = 1e-5
    bn_scale = gamma / jnp.sqrt(running_var + eps)
    bn_shift = beta - running_mean * bn_scale
    return {
        "w1": w1, "b1": b1,
        "bn_scale": bn_scale, "bn_shift": bn_shift,
        "wh": wh, "bh": bh, "ww": ww, "bw": bw,
    }


if __name__ == "__main__":
    B, C, H, W = 2, 4, 16, 16
    key = jax.random.PRNGKey(0)
    kx, kp = jax.random.split(key)
    x = jax.random.normal(kx, (B, C, H, W), jnp.float32)
    params = init_params(kp, C, reduction=32)

    out = ca_forward(x, params)
    out = jax.block_until_ready(out)

    ref = ca_reference(x, params)
    np.testing.assert_allclose(np.asarray(out), np.asarray(ref),
                               rtol=1e-5, atol=1e-5)

    print("KERNEL_OK")
</pallas_src>

<mosaic_0001>
module attributes {stable_mosaic.version = 11 : i64} {
  func.func @stats_kernel(%arg0: i32, %arg1: i32, %arg2: memref<1x16x16x4xf32, #tpu.memory_space<vmem>>, %arg3: memref<4x8xf32, #tpu.memory_space<vmem>>, %arg4: memref<3x8xf32, #tpu.memory_space<vmem>>, %arg5: memref<8x4xf32, #tpu.memory_space<vmem>>, %arg6: memref<8x4xf32, #tpu.memory_space<vmem>>, %arg7: memref<2x4xf32, #tpu.memory_space<vmem>>, %arg8: memref<1x16x4xf32, #tpu.memory_space<vmem>>, %arg9: memref<1x16x4xf32, #tpu.memory_space<vmem>>, %arg10: memref<16x4xf32, #tpu.memory_space<vmem>>) attributes {dimension_semantics = [#tpu.dimension_semantics<parallel>, #tpu.dimension_semantics<arbitrary>], iteration_bounds = array<i64: 2, 1>, scalar_prefetch = 0 : i64, scratch_operands = 1 : i64, tpu.core_type = #tpu.core_type<tc>, window_params = [{transform_indices = @transform_0, window_bounds = array<i64: 1, 16, 16, 4>}, {pipeline_mode = #tpu.pipeline_mode<synchronous>, transform_indices = @transform_1, window_bounds = array<i64: 4, 8>}, {pipeline_mode = #tpu.pipeline_mode<synchronous>, transform_indices = @transform_2, window_bounds = array<i64: 3, 8>}, {pipeline_mode = #tpu.pipeline_mode<synchronous>, transform_indices = @transform_3, window_bounds = array<i64: 8, 4>}, {pipeline_mode = #tpu.pipeline_mode<synchronous>, transform_indices = @transform_4, window_bounds = array<i64: 8, 4>}, {pipeline_mode = #tpu.pipeline_mode<synchronous>, transform_indices = @transform_5, window_bounds = array<i64: 2, 4>}, {transform_indices = @transform_6, window_bounds = array<i64: 1, 16, 4>}, {transform_indices = @transform_7, window_bounds = array<i64: 1, 16, 4>}]} {
    %c0 = arith.constant 0 : index
    %c0_0 = arith.constant 0 : index
    %c0_1 = arith.constant 0 : index
    %c0_2 = arith.constant 0 : index
    %0 = vector.load %arg2[%c0, %c0_0, %c0_1, %c0_2] : memref<1x16x16x4xf32, #tpu.memory_space<vmem>>, vector<1x16x16x4xf32>
    %1 = vector.shape_cast %0 : vector<1x16x16x4xf32> to vector<16x16x4xf32>
    %cst = arith.constant dense<0.000000e+00> : vector<16x4xf32>
    %2 = vector.multi_reduction <add>, %1, %cst [1] : vector<16x16x4xf32> to vector<16x4xf32>
    %cst_3 = arith.constant 6.250000e-02 : f32
    %3 = vector.broadcast %cst_3 : f32 to vector<16x4xf32>
    %4 = arith.mulf %2, %3 : vector<16x4xf32>
    %cst_4 = arith.constant dense<0.000000e+00> : vector<16x4xf32>
    %5 = vector.multi_reduction <add>, %1, %cst_4 [0] : vector<16x16x4xf32> to vector<16x4xf32>
    %c0_i32 = arith.constant 0 : i32
    %6 = arith.cmpi eq, %arg1, %c0_i32 : i32
    %7 = arith.extui %6 : i1 to i32
    %c0_i32_5 = arith.constant 0 : i32
    %8 = arith.cmpi ne, %7, %c0_i32_5 : i32
    scf.if %8 {
      %cst_32 = arith.constant 0.000000e+00 : f32
      %48 = vector.broadcast %cst_32 : f32 to vector<16x4xf32>
      %c0_33 = arith.constant 0 : index
      %c0_34 = arith.constant 0 : index
      %49 = vector.load %arg10[%c0_33, %c0_34] : memref<16x4xf32, #tpu.memory_space<vmem>>, vector<16x4xf32>
      tpu.vector_store %arg10[%c0_33, %c0_34], %48 {strides = array<i32>} : memref<16x4xf32, #tpu.memory_space<vmem>>, vector<16x4xf32>,
    } else {
    }
    %c0_6 = arith.constant 0 : index
    %c0_7 = arith.constant 0 : index
    %9 = vector.load %arg10[%c0_6, %c0_7] : memref<16x4xf32, #tpu.memory_space<vmem>>, vector<16x4xf32>
    %10 = arith.addf %9, %5 : vector<16x4xf32>
    %c0_8 = arith.constant 0 : index
    %c0_9 = arith.constant 0 : index
    %11 = vector.load %arg10[%c0_8, %c0_9] : memref<16x4xf32, #tpu.memory_space<vmem>>, vector<16x4xf32>
    tpu.vector_store %arg10[%c0_8, %c0_9], %10 {strides = array<i32>} : memref<16x4xf32, #tpu.memory_space<vmem>>, vector<16x4xf32>,
    %c0_10 = arith.constant 0 : index
    %c0_11 = arith.constant 0 : index
    %12 = vector.load %arg3[%c0_10, %c0_11] : memref<4x8xf32, #tpu.memory_space<vmem>>, vector<4x8xf32>
    %c0_12 = arith.constant 0 : index
    %c0_13 = arith.constant 0 : index
    %13 = vector.load %arg4[%c0_12, %c0_13] : memref<3x8xf32, #tpu.memory_space<vmem>>, vector<1x8xf32>
    %c1 = arith.constant 1 : index
    %c0_14 = arith.constant 0 : index
    %14 = vector.load %arg4[%c1, %c0_14] : memref<3x8xf32, #tpu.memory_space<vmem>>, vector<1x8xf32>
    %c2 = arith.constant 2 : index
    %c0_15 = arith.constant 0 : index
    %15 = vector.load %arg4[%c2, %c0_15] : memref<3x8xf32, #tpu.memory_space<vmem>>, vector<1x8xf32>
    %cst_16 = arith.constant dense<0.000000e+00> : vector<16x8xf32>
    %16 = tpu.matmul %4, %12, %cst_16 {dimension_numbers = #tpu.dot_dimension_numbers<[1], [0], [0], [1], [0, 0, 1, 1], [], []>} : vector<16x4xf32>, vector<4x8xf32>, vector<16x8xf32> -> vector<16x8xf32>
    %17 = vector.broadcast %13 : vector<1x8xf32> to vector<16x8xf32>
    %18 = arith.addf %16, %17 : vector<16x8xf32>
    %19 = vector.broadcast %14 : vector<1x8xf32> to vector<16x8xf32>
    %20 = arith.mulf %18, %19 : vector<16x8xf32>
    %21 = vector.broadcast %15 : vector<1x8xf32> to vector<16x8xf32>
    %22 = arith.addf %20, %21 : vector<16x8xf32>
    %cst_17 = arith.constant 3.000000e+00 : f32
    %23 = vector.broadcast %cst_17 : f32 to vector<16x8xf32>
    %24 = arith.addf %22, %23 : vector<16x8xf32>
    %cst_18 = arith.constant 0.000000e+00 : f32
    %cst_19 = arith.constant 6.000000e+00 : f32
    %25 = vector.broadcast %cst_18 : f32 to vector<16x8xf32>
    %26 = arith.maximumf %25, %24 : vector<16x8xf32>
    %27 = vector.broadcast %cst_19 : f32 to vector<16x8xf32>
    %28 = arith.minimumf %27, %26 : vector<16x8xf32>
    %cst_20 = arith.constant 0.166666672 : f32
    %29 = vector.broadcast %cst_20 : f32 to vector<16x8xf32>
    %30 = arith.mulf %28, %29 : vector<16x8xf32>
    %31 = arith.mulf %22, %30 : vector<16x8xf32>
    %c0_21 = arith.constant 0 : index
    %c0_22 = arith.constant 0 : index
    %32 = vector.load %arg7[%c0_21, %c0_22] : memref<2x4xf32, #tpu.memory_space<vmem>>, vector<1x4xf32>
    %c0_23 = arith.constant 0 : index
    %c0_24 = arith.constant 0 : index
    %33 = vector.load %arg5[%c0_23, %c0_24] : memref<8x4xf32, #tpu.memory_space<vmem>>, vector<8x4xf32>
    %cst_25 = arith.constant dense<0.000000e+00> : vector<16x4xf32>
    %34 = tpu.matmul %31, %33, %cst_25 {dimension_numbers = #tpu.dot_dimension_numbers<[1], [0], [0], [1], [0, 0, 1, 1], [], []>} : vector<16x8xf32>, vector<8x4xf32>, vector<16x4xf32> -> vector<16x4xf32>
    %35 = vector.broadcast %32 : vector<1x4xf32> to vector<16x4xf32>
    %36 = arith.addf %34, %35 : vector<16x4xf32>
    %37 = arith.negf %36 : vector<16x4xf32>
    %38 = math.exp %37 : vector<16x4xf32>
    %cst_26 = arith.constant 1.000000e+00 : f32
    %39 = vector.broadcast %cst_26 : f32 to vector<16x4xf32>
    %40 = arith.addf %39, %38 : vector<16x4xf32>
    %41 = arith.divf %39, %40 : vector<16x4xf32>
    %c0_27 = arith.constant 0 : index
    %c0_28 = arith.constant 0 : index
    %c0_29 = arith.constant 0 : index
    %42 = vector.load %arg8[%c0_27, %c0_28, %c0_29] : memref<1x16x4xf32, #tpu.memory_space<vmem>>, vector<1x16x4xf32>
    %43 = vector.shape_cast %42 : vector<1x16x4xf32> to vector<16x4xf32>
    %44 = vector.shape_cast %41 : vector<16x4xf32> to vector<1x16x4xf32>
    tpu.vector_store %arg8[%c0_27, %c0_28, %c0_29], %44 {strides = array<i32>} : memref<1x16x4xf32, #tpu.memory_space<vmem>>, vector<1x16x4xf32>,
    %c0_i32_30 = arith.constant 0 : i32
    %45 = arith.cmpi eq, %arg1, %c0_i32_30 : i32
    %46 = arith.extui %45 : i1 to i32
    %c0_i32_31 = arith.constant 0 : i32
    %47 = arith.cmpi ne, %46, %c0_i32_31 : i32
    scf.if %47 {
      %c0_32 = arith.constant 0 : index
      %c0_33 = arith.constant 0 : index
      %48 = vector.load %arg10[%c0_32, %c0_33] : memref<16x4xf32, #tpu.memory_space<vmem>>, vector<16x4xf32>
      %cst_34 = arith.constant 6.250000e-02 : f32
      %49 = vector.broadcast %cst_34 : f32 to vector<16x4xf32>
      %50 = arith.mulf %48, %49 : vector<16x4xf32>
      %cst_35 = arith.constant dense<0.000000e+00> : vector<16x8xf32>
      %51 = tpu.matmul %50, %12, %cst_35 {dimension_numbers = #tpu.dot_dimension_numbers<[1], [0], [0], [1], [0, 0, 1, 1], [], []>} : vector<16x4xf32>, vector<4x8xf32>, vector<16x8xf32> -> vector<16x8xf32>
      %52 = vector.broadcast %13 : vector<1x8xf32> to vector<16x8xf32>
      %53 = arith.addf %51, %52 : vector<16x8xf32>
      %54 = vector.broadcast %14 : vector<1x8xf32> to vector<16x8xf32>
      %55 = arith.mulf %53, %54 : vector<16x8xf32>
      %56 = vector.broadcast %15 : vector<1x8xf32> to vector<16x8xf32>
      %57 = arith.addf %55, %56 : vector<16x8xf32>
      %cst_36 = arith.constant 3.000000e+00 : f32
      %58 = vector.broadcast %cst_36 : f32 to vector<16x8xf32>
      %59 = arith.addf %57, %58 : vector<16x8xf32>
      %cst_37 = arith.constant 0.000000e+00 : f32
      %cst_38 = arith.constant 6.000000e+00 : f32
      %60 = vector.broadcast %cst_37 : f32 to vector<16x8xf32>
      %61 = arith.maximumf %60, %59 : vector<16x8xf32>
      %62 = vector.broadcast %cst_38 : f32 to vector<16x8xf32>
      %63 = arith.minimumf %62, %61 : vector<16x8xf32>
      %cst_39 = arith.constant 0.166666672 : f32
      %64 = vector.broadcast %cst_39 : f32 to vector<16x8xf32>
      %65 = arith.mulf %63, %64 : vector<16x8xf32>
      %66 = arith.mulf %57, %65 : vector<16x8xf32>
      %c1_40 = arith.constant 1 : index
      %c0_41 = arith.constant 0 : index
      %67 = vector.load %arg7[%c1_40, %c0_41] : memref<2x4xf32, #tpu.memory_space<vmem>>, vector<1x4xf32>
      %c0_42 = arith.constant 0 : index
      %c0_43 = arith.constant 0 : index
      %68 = vector.load %arg6[%c0_42, %c0_43] : memref<8x4xf32, #tpu.memory_space<vmem>>, vector<8x4xf32>
      %cst_44 = arith.constant dense<0.000000e+00> : vector<16x4xf32>
      %69 = tpu.matmul %66, %68, %cst_44 {dimension_numbers = #tpu.dot_dimension_numbers<[1], [0], [0], [1], [0, 0, 1, 1], [], []>} : vector<16x8xf32>, vector<8x4xf32>, vector<16x4xf32> -> vector<16x4xf32>
      %70 = vector.broadcast %67 : vector<1x4xf32> to vector<16x4xf32>
      %71 = arith.addf %69, %70 : vector<16x4xf32>
      %72 = arith.negf %71 : vector<16x4xf32>
      %73 = math.exp %72 : vector<16x4xf32>
      %cst_45 = arith.constant 1.000000e+00 : f32
      %74 = vector.broadcast %cst_45 : f32 to vector<16x4xf32>
      %75 = arith.addf %74, %73 : vector<16x4xf32>
      %76 = arith.divf %74, %75 : vector<16x4xf32>
      %c0_46 = arith.constant 0 : index
      %c0_47 = arith.constant 0 : index
      %c0_48 = arith.constant 0 : index
      %77 = vector.load %arg9[%c0_46, %c0_47, %c0_48] : memref<1x16x4xf32, #tpu.memory_space<vmem>>, vector<1x16x4xf32>
      %78 = vector.shape_cast %77 : vector<1x16x4xf32> to vector<16x4xf32>
      %79 = vector.shape_cast %76 : vector<16x4xf32> to vector<1x16x4xf32>
      tpu.vector_store %arg9[%c0_46, %c0_47, %c0_48], %79 {strides = array<i32>} : memref<1x16x4xf32, #tpu.memory_space<vmem>>, vector<1x16x4xf32>,
    } else {
    }
    return
  }
  func.func @transform_0(%arg0: i32, %arg1: i32) -> (i32, i32, i32, i32) {
    %c0_i32 = arith.constant 0 : i32
    %c0_i32_0 = arith.constant 0 : i32
    %c0_i32_1 = arith.constant 0 : i32
    return %arg0, %arg1, %c0_i32, %c0_i32_0 : i32, i32, i32, i32
  }
  func.func @transform_1(%arg0: i32, %arg1: i32) -> (i32, i32) {
    %c0_i32 = arith.constant 0 : i32
    %c0_i32_0 = arith.constant 0 : i32
    %c0_i32_1 = arith.constant 0 : i32
    return %c0_i32, %c0_i32_0 : i32, i32
  }
  func.func @transform_2(%arg0: i32, %arg1: i32) -> (i32, i32) {
    %c0_i32 = arith.constant 0 : i32
    %c0_i32_0 = arith.constant 0 : i32
    %c0_i32_1 = arith.constant 0 : i32
    return %c0_i32, %c0_i32_0 : i32, i32
  }
  func.func @transform_3(%arg0: i32, %arg1: i32) -> (i32, i32) {
    %c0_i32 = arith.constant 0 : i32
    %c0_i32_0 = arith.constant 0 : i32
    %c0_i32_1 = arith.constant 0 : i32
    return %c0_i32, %c0_i32_0 : i32, i32
  }
  func.func @transform_4(%arg0: i32, %arg1: i32) -> (i32, i32) {
    %c0_i32 = arith.constant 0 : i32
    %c0_i32_0 = arith.constant 0 : i32
    %c0_i32_1 = arith.constant 0 : i32
    return %c0_i32, %c0_i32_0 : i32, i32
  }
  func.func @transform_5(%arg0: i32, %arg1: i32) -> (i32, i32) {
    %c0_i32 = arith.constant 0 : i32
    %c0_i32_0 = arith.constant 0 : i32
    %c0_i32_1 = arith.constant 0 : i32
    return %c0_i32, %c0_i32_0 : i32, i32
  }
  func.func @transform_6(%arg0: i32, %arg1: i32) -> (i32, i32, i32) {
    %c0_i32 = arith.constant 0 : i32
    %c0_i32_0 = arith.constant 0 : i32
    return %arg0, %arg1, %c0_i32 : i32, i32, i32
  }
  func.func @transform_7(%arg0: i32, %arg1: i32) -> (i32, i32, i32) {
    %c0_i32 = arith.constant 0 : i32
    %c0_i32_0 = arith.constant 0 : i32
    %c0_i32_1 = arith.constant 0 : i32
    return %arg0, %c0_i32, %c0_i32_0 : i32, i32, i32
  }
}

</mosaic_0001>

<bundles_post_ra>
// kernel: tpu_custom_call.1
= control target key start
LH: loop header
LB: loop body
LE: loop exit
PB: predicated region body
PF: predicated region fallthrough
CT: control target
= control target key end

     0   :  { %s1320_s24 = smov 0   ;;  %s1322_s25 = smov 0   ;;  %s1590_s0 = inlined_call_operand.vmem [shape: f32[2,16,16,4], index: 0, kind: input, shape index: {}]   ;;  %s1591_s1 = inlined_call_operand.vmem [shape: f32[4,8], index: 1, kind: input, shape index: {}]   ;;  %s1592_s2 = inlined_call_operand.vmem [shape: f32[3,8], index: 2, kind: input, shape index: {}]   ;;  %s1593_s3 = inlined_call_operand.vmem [shape: f32[8,4], index: 3, kind: input, shape index: {}]   ;;  %s1594_s4 = inlined_call_operand.vmem [shape: f32[8,4], index: 4, kind: input, shape index: {}]   ;;  %s1595_s5 = inlined_call_operand.vmem [shape: f32[2,4], index: 5, kind: input, shape index: {}]   ;;  %s1596_s6 = inlined_call_operand.vmem [shape: f32[2,16,4], index: 6, kind: output, shape index: {0}]   ;;  %s1597_s7 = inlined_call_operand.vmem [shape: f32[2,16,4], index: 7, kind: output, shape index: {1}]  }
   0x1   :  { %s1324_s26 = smov 0  }
   0x2 LB: > { %s30_s27 = sadd.s32 1, %s1273_s25  ;;  %p1151_p0 = scmp.ge.s32.totalorder %s1277_s26, 1  ;;  %s1277_s26 = sphi %s1324_s26, %s18_s26   ;;  %s1273_s25 = sphi %s1322_s25, %s1599_s25   ;;  %s1269_s24 = sphi %s1320_s24, %s1598_s24  }
   0x3   : > { %p32_p1 = scmp.ge.s32.totalorder %s30_s27, 2  ;;  %p262_p2 = scmp.lt.s32.totalorder %s1277_s26, 3 }
   0x5   : > { %s1601_s27 = smov (%p32_p1, %s30_s27), 0  ;;  %p263_p3 = pnand %p1151_p0, %p262_p2 }
   0x6   : > { %p309_p4 = scmp.lt.s32.totalorder (!%p263_p3), %s1269_s24, 1 }
   0x7   : > { %266 = sbr.rel (%p263_p3) target bundleno = 525 (0x20d), region = 44 }
   0xc   : > { %v1341_v0 = vld [vmem:[%s1591_s1] sm:$0xf]  ;;  %vm618_vm0 = vcmask 1043456   ;;  %s1603_s24 = smov (!%p309_p4, %s1269_s24), 1  ;;  %vm366_vm1 = vcmask 31744   ;;  %v1279_v1 = vmov 0.0  }
   0xd   : > { %1194 = vmatprep.subr.msk.mxu0 %vm618_vm0, %v1341_v0  ;;  %561 = vst.msk [vmem:[#allocation2] sm:$0xff] %vm366_vm1, %v1279_v1  ;;  %562 = vst.msk [vmem:[#allocation2 + $0x8] sm:$0xff] %vm366_vm1, %v1279_v1  ;;  %s1179_s30 = sshll.u32 %s1603_s24, 8  ;;  %vm593_vm2 = vcmask 1041409   ;;  %vm595_vm3 = vcmask 1042434   ;;  %vm597_vm4 = vcmask 1043459  }
   0xe   : > { %1195 = vmatpush3.msk.msra.mxu0 %vm618_vm0, %v1341_v0  ;;  %s1357_s10 = scalar_lea.vmem %s1590_s0, %s1179_s30  ;;  %vm599_vm5 = vcmask 1044484   ;;  %vm601_vm6 = vcmask 1045509   ;;  %vm603_vm7 = vcmask 1046534   ;;  %vm605_vm8 = vcmask 1047559   ;;  %s1180_s29 = sshll.u32 %s1603_s24, 4 }
   0xf   : > { %1204 = vmatprep.subr.msk.mxu0 %vm618_vm0, %v1341_v0  ;;  %v334_v2 = vld [vmem:[%s1357_s10] sm:$0xff]  ;;  %v335_v3 = vld [vmem:[%s1357_s10 + $0x8] sm:$0xff]  ;;  %v336_v4 = vld [vmem:[%s1357_s10 + $0x10] sm:$0xff]  ;;  %vm725_vm9 = vcmask 64512   ;;  %s327_s9 = scalar_lea.vmem %s1596_s6, %s1180_s29  ;;  %s333_s24 = scalar_lea.vmem %s1597_s7, %s1180_s29 }
  0x10   : > { %v337_v5 = vld [vmem:[%s1357_s10 + $0x18] sm:$0xff]  ;;  %v338_v6 = vld [vmem:[%s1357_s10 + $0x20] sm:$0xff]  ;;  %v339_v7 = vld [vmem:[%s1357_s10 + $0x28] sm:$0xff]  ;;  %v1366_v8 = vsel %vm366_vm1, %v334_v2, 0.0  ;;  %v1369_v9 = vsel %vm366_vm1, %v335_v3, 0.0  ;;  %v1372_v10 = vsel %vm366_vm1, %v336_v4, 0.0 }
  0x11   : > { %v340_v11 = vld [vmem:[%s1357_s10 + $0x30] sm:$0xff]  ;;  %v341_v12 = vld [vmem:[%s1357_s10 + $0x38] sm:$0xff]  ;;  %v342_v13 = vld [vmem:[%s1357_s10 + $0x40] sm:$0xff]  ;;  %v369_v14 = vadd.f32 %v1369_v9, %v1366_v8  ;;  %v1380_v15 = vsel %vm366_vm1, %v337_v5, 0.0  ;;  %v1383_v16 = vsel %vm366_vm1, %v338_v6, 0.0  ;;  %v1386_v17 = vsel %vm366_vm1, %v339_v7, 0.0 }
  0x12   : > { %v343_v18 = vld [vmem:[%s1357_s10 + $0x48] sm:$0xff]  ;;  %v344_v19 = vld [vmem:[%s1357_s10 + $0x50] sm:$0xff]  ;;  %v345_v20 = vld [vmem:[%s1357_s10 + $0x58] sm:$0xff]  ;;  %v378_v21 = vadd.f32 %v1380_v15, %v1372_v10  ;;  %v387_v22 = vadd.f32 %v1386_v17, %v1383_v16  ;;  %v1396_v23 = vsel %vm366_vm1, %v340_v11, 0.0  ;;  %v1399_v24 = vsel %vm366_vm1, %v341_v12, 0.0 }
  0x13   : > { %v346_v25 = vld [vmem:[%s1357_s10 + $0x60] sm:$0xff]  ;;  %v370_v26 = vrot.slane %v369_v14, 4  ;;  %v396_v27 = vadd.f32 %v1399_v24, %v1396_v23  ;;  %v1405_v28 = vsel %vm366_vm1, %v342_v13, 0.0  ;;  %v1408_v29 = vsel %vm366_vm1, %v343_v18, 0.0  ;;  %v347_v30 = vld [vmem:[%s1357_s10 + $0x68] sm:$0xff]  ;;  %v348_v31 = vld [vmem:[%s1357_s10 + $0x70] sm:$0xff] }
  0x14   : > { %v379_v32 = vrot.slane %v378_v21, 4  ;;  %v388_v33 = vrot.slane %v387_v22, 4  ;;  %v405_v34 = vadd.f32 %v1408_v29, %v1405_v28  ;;  %v1415_v35 = vsel %vm366_vm1, %v344_v19, 0.0  ;;  %v349_v40 = vld [vmem:[%s1357_s10 + $0x78] sm:$0xff]  ;;  %v350_v2 = vld [vmem:[%s1357_s10 + $0x80] sm:$0xff]  ;;  %v351_v7 = vld [vmem:[%s1357_s10 + $0x88] sm:$0xff] }
  0x15   : > { %v371_v36 = vadd.f32 %v370_v26, %v369_v14  ;;  %v397_v37 = vrot.slane %v396_v27, 4  ;;  %v1418_v38 = vsel %vm366_vm1, %v345_v20, 0.0  ;;  %v1421_v39 = vsel %vm366_vm1, %v346_v25, 0.0  ;;  %v352_v11 = vld [vmem:[%s1357_s10 + $0x90] sm:$0xff]  ;;  %v353_v19 = vld [vmem:[%s1357_s10 + $0x98] sm:$0xff]  ;;  %v354_v26 = vld [vmem:[%s1357_s10 + $0xa0] sm:$0xff] }
  0x16   : > { %v380_v41 = vadd.f32 %v379_v32, %v378_v21  ;;  %v389_v42 = vadd.f32 %v388_v33, %v387_v22  ;;  %v406_v43 = vrot.slane %v405_v34, 4  ;;  %v414_v44 = vadd.f32 %v1418_v38, %v1415_v35 }
  0x17   : > { %v372_v45 = vrot.slane %v371_v36, 2  ;;  %v398_v46 = vadd.f32 %v397_v37, %v396_v27  ;;  %v1427_v47 = vsel %vm366_vm1, %v347_v30, 0.0  ;;  %v1430_v48 = vsel %vm366_vm1, %v348_v31, 0.0  ;;  %v355_v27 = vld [vmem:[%s1357_s10 + $0xa8] sm:$0xff] }
  0x18   : > { %v381_v49 = vrot.slane %v380_v41, 2  ;;  %v390_v50 = vrot.slane %v389_v42, 2  ;;  %v407_v51 = vadd.f32 %v406_v43, %v405_v34  ;;  %v415_v52 = vrot.slane %v414_v44, 4 }
  0x19   : > { %v373_v53 = vadd.f32 %v372_v45, %v371_v36  ;;  %v399_v54 = vrot.slane %v398_v46, 2  ;;  %v423_v55 = vadd.f32 %v1427_v47, %v1421_v39  ;;  %v1435_v56 = vsel %vm366_vm1, %v349_v40, 0.0 }
  0x1a   : > { %v382_v57 = vadd.f32 %v381_v49, %v380_v41  ;;  %v391_v58 = vadd.f32 %v390_v50, %v389_v42  ;;  %v408_v59 = vrot.slane %v407_v51, 2  ;;  %v416_v60 = vadd.f32 %v415_v52, %v414_v44  ;;  %v356_v41 = vld [vmem:[%s1357_s10 + $0xb0] sm:$0xff]  ;;  %v357_v42 = vld [vmem:[%s1357_s10 + $0xb8] sm:$0xff] }
  0x1b   : > { %v374_v61 = vrot.slane %v373_v53, 1  ;;  %v400_v62 = vadd.f32 %v399_v54, %v398_v46  ;;  %v424_v63 = vrot.slane %v423_v55, 4  ;;  %v432_v1 = vadd.f32 %v1435_v56, %v1430_v48 }
  0x1c   : > { %v383_v3 = vrot.slane %v382_v57, 1  ;;  %v392_v4 = vrot.slane %v391_v58, 1  ;;  %v409_v5 = vadd.f32 %v408_v59, %v407_v51  ;;  %v417_v6 = vrot.slane %v416_v60, 2 }
  0x1d   : > { %v375_v12 = vadd.f32 %v374_v61, %v373_v53  ;;  %v401_v13 = vrot.slane %v400_v62, 1  ;;  %v425_v14 = vadd.f32 %v424_v63, %v423_v55  ;;  %v433_v18 = vrot.slane %v432_v1, 4 }
  0x1e   : > { %v384_v20 = vadd.f32 %v383_v3, %v382_v57  ;;  %v393_v21 = vadd.f32 %v392_v4, %v391_v58  ;;  %v410_v22 = vrot.slane %v409_v5, 1  ;;  %v418_v25 = vadd.f32 %v417_v6, %v416_v60 }
  0x1f   : > { %v402_v30 = vadd.f32 %v401_v13, %v400_v62  ;;  %v426_v31 = vrot.slane %v425_v14, 2  ;;  %v434_v32 = vadd.f32 %v433_v18, %v432_v1  ;;  %v1446_v33 = vsel %vm366_vm1, %v350_v2, 0.0 }
  0x20   : > { %v411_v34 = vadd.f32 %v410_v22, %v409_v5  ;;  %v419_v36 = vrot.slane %v418_v25, 1  ;;  %v1449_v37 = vsel %vm366_vm1, %v351_v7, 0.0  ;;  %v1452_v40 = vsel %vm366_vm1, %v352_v11, 0.0 }
  0x21   : > { %v427_v43 = vadd.f32 %v426_v31, %v425_v14  ;;  %v435_v44 = vrot.slane %v434_v32, 2  ;;  %v441_v45 = vadd.f32 %v1449_v37, %v1446_v33  ;;  %v1459_v46 = vsel %vm366_vm1, %v353_v19, 0.0 }
  0x22   : > { %v420_v49 = vadd.f32 %v419_v36, %v418_v25  ;;  %v450_v50 = vadd.f32 %v1459_v46, %v1452_v40  ;;  %v1464_v51 = vsel %vm366_vm1, %v354_v26, 0.0  ;;  %v1467_v52 = vsel %vm366_vm1, %v355_v27, 0.0 }
  0x23   : > { %v428_v53 = vrot.slane %v427_v43, 1  ;;  %v436_v54 = vadd.f32 %v435_v44, %v434_v32  ;;  %v442_v55 = vrot.slane %v441_v45, 4  ;;  %v459_v57 = vadd.f32 %v1467_v52, %v1464_v51 }
  0x24   : > { %v451_v58 = vrot.slane %v450_v50, 4  ;;  %v1472_v59 = vsel %vm366_vm1, %v356_v41, 0.0  ;;  %v1475_v60 = vsel %vm366_vm1, %v357_v42, 0.0  ;;  %v511_v61 = vmul.f32 0.0625, %v375_v12  ;;  %v358_v41 = vld [vmem:[%s1357_s10 + $0xc0] sm:$0xff] }
  0x25   : > { %v429_v62 = vadd.f32 %v428_v53, %v427_v43  ;;  %v437_v63 = vrot.slane %v436_v54, 1  ;;  %v443_v1 = vadd.f32 %v442_v55, %v441_v45  ;;  %v460_v2 = vrot.slane %v459_v57, 4  ;;  %v360_v45 = vld [vmem:[%s1357_s10 + $0xd0] sm:$0xff] }
  0x26   : > { %v452_v3 = vadd.f32 %v451_v58, %v450_v50  ;;  %v512_v4 = vmul.f32 0.0625, %v384_v20  ;;  %v513_v5 = vmul.f32 0.0625, %v393_v21  ;;  %v514_v6 = vmul.f32 0.0625, %v402_v30 }
  0x27   : > { %v438_v7 = vadd.f32 %v437_v63, %v436_v54  ;;  %v444_v11 = vrot.slane %v443_v1, 2  ;;  %v461_v13 = vadd.f32 %v460_v2, %v459_v57  ;;  %v515_v14 = vmul.f32 0.0625, %v411_v34 }
  0x28   : > { %v453_v18 = vrot.slane %v452_v3, 2  ;;  %v516_v19 = vmul.f32 0.0625, %v420_v49  ;;  %v517_v22 = vmul.f32 0.0625, %v429_v62  ;;  %v527_v12 = vadd.f32 %v1372_v10, %v1366_v8  ;;  %v363_v62 = vld [vmem:[%s1357_s10 + $0xe8] sm:$0xff] }
  0x29   : > { %v445_v25 = vadd.f32 %v444_v11, %v443_v1  ;;  %v518_v26 = vmul.f32 0.0625, %v438_v7  ;;  %v542_v27 = vadd.f32 %v1380_v15, %v1369_v9  ;;  %v594_v20 = vsel %vm593_vm2, %v512_v4, %v511_v61 }
  0x2a   : > { %v454_v21 = vadd.f32 %v453_v18, %v452_v3  ;;  %v528_v30 = vadd.f32 %v527_v12, %v1383_v16  ;;  %v596_v31 = vsel %vm595_vm3, %v513_v5, %v594_v20  ;;  %v462_v32 = vrot.slane %v461_v13, 2 }
  0x2b   : > { %v446_v34 = vrot.slane %v445_v25, 1  ;;  %v543_v36 = vadd.f32 %v542_v27, %v1386_v17  ;;  %v598_v8 = vsel %vm597_vm4, %v514_v6, %v596_v31  ;;  %v468_v10 = vadd.f32 %v1475_v60, %v1472_v59  ;;  %v359_v17 = vld [vmem:[%s1357_s10 + $0xc8] sm:$0xff]  ;;  %v365_v6 = vld [vmem:[%s1357_s10 + $0xf8] sm:$0xff] }
  0x2c   : > { %v529_v9 = vadd.f32 %v528_v30, %v1396_v23  ;;  %v600_v15 = vsel %vm599_vm5, %v515_v14, %v598_v8  ;;  %v455_v42 = vrot.slane %v454_v21, 1  ;;  %v463_v16 = vadd.f32 %v462_v32, %v461_v13  ;;  %v361_v23 = vld [vmem:[%s1357_s10 + $0xd8] sm:$0xff] }
  0x2d   : > { %v544_v43 = vadd.f32 %v543_v36, %v1399_v24  ;;  %v602_v44 = vsel %vm601_vm6, %v516_v19, %v600_v15  ;;  %v447_v49 = vadd.f32 %v446_v34, %v445_v25  ;;  %v469_v50 = vrot.slane %v468_v10, 4  ;;  %v362_v24 = vld [vmem:[%s1357_s10 + $0xe0] sm:$0xff] }
  0x2e   : > { %v530_v53 = vadd.f32 %v529_v9, %v1405_v28  ;;  %v604_v54 = vsel %vm603_vm7, %v517_v22, %v602_v44  ;;  %v456_v55 = vadd.f32 %v455_v42, %v454_v21  ;;  %v464_v57 = vrot.slane %v463_v16, 1 }
  0x2f   : > { %v545_v58 = vadd.f32 %v544_v43, %v1408_v29  ;;  %v606_v61 = vsel %vm605_vm8, %v518_v26, %v604_v54  ;;  %v470_v63 = vadd.f32 %v469_v50, %v468_v10  ;;  %v475_v1 = vsel %vm366_vm1, %v358_v41, 0.0  ;;  %v364_v29 = vld [vmem:[%s1357_s10 + $0xf0] sm:$0xff] }
  0x30   : > { %v531_v2 = vadd.f32 %v530_v53, %v1415_v35  ;;  %1196 = vmatprep.mubr.msk.f32.mxu0 %vm366_vm1, %v606_v61  ;;  %v465_v28 = vadd.f32 %v464_v57, %v463_v16  ;;  %v476_v3 = vsel %vm366_vm1, %v359_v17, 0.0  ;;  %v1507_v4 = vsel %vm366_vm1, %v360_v45, 0.0 }
  0x31   : > { %v546_v5 = vadd.f32 %v545_v58, %v1418_v38  ;;  %v471_v7 = vrot.slane %v470_v63, 2  ;;  %v477_v11 = vadd.f32 %v476_v3, %v475_v1  ;;  %v485_v13 = vsel %vm366_vm1, %v361_v23, 0.0 }
  0x32   : > { %v532_v14 = vadd.f32 %v531_v2, %v1421_v39  ;;  %v486_v35 = vadd.f32 %v485_v13, %v1507_v4  ;;  %v493_v18 = vsel %vm366_vm1, %v362_v24, 0.0  ;;  %v494_v19 = vsel %vm366_vm1, %v363_v62, 0.0 }
  0x33   : > { %v547_v22 = vadd.f32 %v546_v5, %v1427_v47  ;;  %v472_v12 = vadd.f32 %v471_v7, %v470_v63  ;;  %v478_v25 = vrot.slane %v477_v11, 4  ;;  %v495_v26 = vadd.f32 %v494_v19, %v493_v18 }
  0x34   : > { %v533_v38 = vadd.f32 %v532_v14, %v1430_v48  ;;  %v487_v27 = vrot.slane %v486_v35, 4  ;;  %v502_v20 = vsel %vm366_vm1, %v364_v29, 0.0  ;;  %v503_v21 = vsel %vm366_vm1, %v365_v6, 0.0 }
  0x35   : > { %v548_v39 = vadd.f32 %v547_v22, %v1435_v56  ;;  %v473_v30 = vrot.slane %v472_v12, 1  ;;  %v479_v31 = vadd.f32 %v478_v25, %v477_v11  ;;  %v496_v32 = vrot.slane %v495_v26, 4 }
  0x36   : > { %v534_v34 = vadd.f32 %v533_v38, %v1446_v33  ;;  %v488_v36 = vadd.f32 %v487_v27, %v486_v35  ;;  %v504_v8 = vadd.f32 %v503_v21, %v502_v20  ;;  %v519_v47 = vmul.f32 0.0625, %v447_v49 }
  0x37   : > { %v549_v10 = vadd.f32 %v548_v39, %v1449_v37  ;;  %v474_v9 = vadd.f32 %v473_v30, %v472_v12  ;;  %v480_v15 = vrot.slane %v479_v31, 2  ;;  %v497_v48 = vadd.f32 %v496_v32, %v495_v26  ;;  %v563_v26 = vld [vmem:[#allocation2] sm:$0xff]  ;;  %v564_v39 = vld [vmem:[#allocation2 + $0x8] sm:$0xff] }
  0x38   : > { %v535_v41 = vadd.f32 %v534_v34, %v1452_v40  ;;  %v489_v42 = vrot.slane %v488_v36, 2  ;;  %v505_v16 = vrot.slane %v504_v8, 4  ;;  %v520_v43 = vmul.f32 0.0625, %v456_v55  ;;  %v1162_v34 = vld [vmem:[%s1592_s2 + $0x1] ss:$0 sm:$0xff] }
  0x39   : > { %v550_v56 = vadd.f32 %v549_v10, %v1459_v46  ;;  %v481_v44 = vadd.f32 %v480_v15, %v479_v31  ;;  %v498_v17 = vrot.slane %v497_v48, 2  ;;  %v521_v45 = vmul.f32 0.0625, %v465_v28 }
  0x3a   : > { %v536_v33 = vadd.f32 %v535_v41, %v1464_v51  ;;  %v490_v50 = vadd.f32 %v489_v42, %v488_v36  ;;  %v506_v53 = vadd.f32 %v505_v16, %v504_v8  ;;  %v522_v49 = vmul.f32 0.0625, %v474_v9 }
  0x3b   : > { %v551_v37 = vadd.f32 %v550_v56, %v1467_v52  ;;  %v482_v54 = vrot.slane %v481_v44, 1  ;;  %v499_v23 = vadd.f32 %v498_v17, %v497_v48  ;;  %v607_v57 = vsel %vm593_vm2, %v520_v43, %v519_v47  ;;  %v1163_v47 = vld [vmem:[%s1592_s2 + $0x2] ss:$0 sm:$0xff] }
  0x3c   : > { %v537_v40 = vadd.f32 %v536_v33, %v1472_v59  ;;  %v491_v58 = vrot.slane %v490_v50, 1  ;;  %v507_v55 = vrot.slane %v506_v53, 2  ;;  %v608_v46 = vsel %vm595_vm3, %v521_v45, %v607_v57 }
  0x3d   : > { %v552_v61 = vadd.f32 %v551_v37, %v1475_v60  ;;  %v483_v24 = vadd.f32 %v482_v54, %v481_v44  ;;  %v500_v62 = vrot.slane %v499_v23, 1  ;;  %v609_v28 = vsel %vm597_vm4, %v522_v49, %v608_v46 }
  0x3e   : > { %v492_v51 = vadd.f32 %v491_v58, %v490_v50  ;;  %v508_v63 = vadd.f32 %v507_v55, %v506_v53  ;;  %v538_v2 = vadd.f32 %v537_v40, %v475_v1 }
  0x3f   : > { %v501_v52 = vadd.f32 %v500_v62, %v499_v23  ;;  %v523_v5 = vmul.f32 0.0625, %v483_v24  ;;  %v553_v29 = vadd.f32 %v552_v61, %v476_v3 }
  0x40   : > { %v509_v6 = vrot.slane %v508_v63, 1  ;;  %v524_v7 = vmul.f32 0.0625, %v492_v51  ;;  %v539_v59 = vadd.f32 %v538_v2, %v1507_v4 }
  0x41   : > { %v525_v11 = vmul.f32 0.0625, %v501_v52  ;;  %v554_v14 = vadd.f32 %v553_v29, %v485_v13  ;;  %v610_v35 = vsel %vm599_vm5, %v523_v5, %v609_v28 }
  0x42   : > { %v510_v22 = vadd.f32 %v509_v6, %v508_v63  ;;  %v540_v60 = vadd.f32 %v539_v59, %v493_v18  ;;  %v611_v12 = vsel %vm601_vm6, %v524_v7, %v610_v35  ;;  %v1164_v6 = vld [vmem:[%s1595_s5] ss:$0 sm:$0xff] }
  0x43   : > { %v555_v25 = vadd.f32 %v554_v14, %v494_v19  ;;  %v612_v1 = vsel %vm603_vm7, %v525_v11, %v611_v12 }
  0x44   : > { %v526_v38 = vmul.f32 0.0625, %v510_v22  ;;  %v541_v27 = vadd.f32 %v540_v60, %v502_v20  ;;  %v720_v20 = vld [vmem:[%s1593_s3] sm:$0xff] }
  0x45   : > { %v556_v3 = vadd.f32 %v555_v25, %v503_v21  ;;  %1199 = vmatprep.subr.mxu1 %v720_v20  ;;  %v1158_v21 = vld [vmem:[%s1592_s2] ss:$0 sm:$0xff]  ;;  %v1172_v60 = vld [vmem:[%s1595_s5 + $0x1] ss:$0 sm:$0xff] }
  0x46   : > { %v565_v30 = vadd.f32 %v563_v26, %v541_v27  ;;  %v613_v31 = vsel %vm605_vm8, %v526_v38, %v612_v1  ;;  %1200 = vmatpush3.msra.mxu1 %v720_v20 }
  0x47   : > { %v566_v4 = vadd.f32 %v564_v39, %v556_v3  ;;  %1197 = vmatmul.mubr.msk.f32.vlgmr.msra.gmra.mxu0 %vm366_vm1, %v613_v31 }
  0x48   : > { %567 = vst.msk [vmem:[#allocation2] sm:$0xff] %vm366_vm1, %v565_v30  ;;  %1205 = vmatpush3.msk.msra.mxu0 %vm618_vm0, %v1341_v0  ;;  %v924_v0 = vld [vmem:[%s1594_s4] sm:$0xff] }
  0x49   : > { %568 = vst.msk [vmem:[#allocation2 + $0x8] sm:$0xff] %vm366_vm1, %v566_v4  ;;  %1209 = vmatprep.subr.mxu1 %v924_v0 }
  0x4f   : > { %v824_v13 = vld [vmem:[#allocation2] sm:$0xff] }
  0x50   : > { %v826_v18 = vmul.f32 0.0625, %v824_v13  ;;  %v825_v19 = vld [vmem:[#allocation2 + $0x8] sm:$0xff] }
  0x51   : > { %v827_v32 = vmul.f32 0.0625, %v825_v19 }
  0x52   : > { %1206 = vmatprep.mubr.msk.f32.mxu0 %vm366_vm1, %v826_v18 }
  0x53   : > { %1207 = vmatmul.mubr.msk.f32.vlgmr.msra.gmra.mxu0 %vm366_vm1, %v827_v32 }
 0x107   : > { %v1198_v36 = vpop.f32.mrf.mxu0 }
 0x108   : > { %v694_v8 = vadd.f32 %v1198_v36, %v1158_v21 }
 0x109   : > { %v688_v10 = vpop.f32.mrf.mxu0 }
 0x10a   : > { %v702_v9 = vmul.f32 %v1162_v34, %v694_v8  ;;  %v689_v15 = vadd.f32 %v1158_v21, %v688_v10 }
 0x10c   : > { %v708_v48 = vadd.f32 %v1163_v47, %v702_v9  ;;  %v701_v41 = vmul.f32 %v1162_v34, %v689_v15 }
 0x10e   : > { %v710_v42 = vadd.f32 3.0, %v708_v48  ;;  %v707_v16 = vadd.f32 %v1163_v47, %v701_v41 }
 0x110   : > { %v712_v43 = vmax.f32 %v710_v42, 0.0  ;;  %v709_v56 = vadd.f32 3.0, %v707_v16 }
 0x112   : > { %v714_v44 = vmin.f32 %v712_v43, 6.0  ;;  %v711_v17 = vmax.f32 %v709_v56, 0.0 }
 0x113   : > { %v1208_v45 = vpop.f32.mrf.mxu0 }
 0x114   : > { %v716_v33 = vmul.f32 0.16666667, %v714_v44  ;;  %v906_v50 = vadd.f32 %v1208_v45, %v1158_v21  ;;  %v713_v53 = vmin.f32 %v711_v17, 6.0 }
 0x115   : > { %v900_v49 = vpop.f32.mrf.mxu0 }
 0x116   : > { %v910_v37 = vmul.f32 %v1162_v34, %v906_v50  ;;  %v715_v54 = vmul.f32 0.16666667, %v713_v53  ;;  %v901_v23 = vadd.f32 %v1158_v21, %v900_v49  ;;  %v718_v57 = vmul.f32 %v716_v33, %v708_v48 }
 0x118   : > { %v912_v40 = vadd.f32 %v1163_v47, %v910_v37  ;;  %v717_v58 = vmul.f32 %v715_v54, %v707_v16  ;;  %v909_v55 = vmul.f32 %v1162_v34, %v901_v23 }
 0x11a   : > { %v914_v46 = vadd.f32 3.0, %v912_v40  ;;  %1201 = vmatprep.mubr.msk.f32.mxu1 %vm725_vm9, %v717_v58  ;;  %v911_v61 = vadd.f32 %v1163_v47, %v909_v55 }
 0x11b   : > { %1202 = vmatmul.mubr.msk.f32.vlgmr.msra.gmra.mxu1 %vm725_vm9, %v718_v57 }
 0x11c   : > { %v916_v24 = vmax.f32 %v914_v46, 0.0  ;;  %v913_v62 = vadd.f32 3.0, %v911_v61  ;;  %1210 = vmatpush3.msra.mxu1 %v924_v0 }
 0x11e   : > { %v918_v51 = vmin.f32 %v916_v24, 6.0  ;;  %v915_v63 = vmax.f32 %v913_v62, 0.0 }
 0x120   : > { %v917_v2 = vmin.f32 %v915_v63, 6.0  ;;  %v920_v28 = vmul.f32 0.16666667, %v918_v51 }
 0x122   : > { %v919_v52 = vmul.f32 0.16666667, %v917_v2  ;;  %v922_v29 = vmul.f32 %v920_v28, %v912_v40 }
 0x124   : > { %v921_v5 = vmul.f32 %v919_v52, %v911_v61 }
 0x126   : > { %1211 = vmatprep.mubr.msk.f32.mxu1 %vm725_vm9, %v921_v5 }
 0x127   : > { %1212 = vmatmul.mubr.msk.f32.vlgmr.msra.gmra.mxu1 %vm725_vm9, %v922_v29 }
 0x1db   : > { %v1203_v7 = vpop.f32.mrf.mxu1 }
 0x1dc   : > { %v804_v59 = vadd.f32 %v1203_v7, %v1164_v6 }
 0x1dd   : > { %v798_v11 = vpop.f32.mrf.mxu1 }
 0x1de   : > { %v1168_v14 = vmul.f32 -1.442695, %v804_v59  ;;  %v799_v35 = vadd.f32 %v1164_v6, %v798_v11 }
 0x1e0   : > { %1239 = vpow2.f32 %v1168_v14  ;;  %v1167_v22 = vmul.f32 -1.442695, %v799_v35 }
 0x1e2   : > { %1241 = vpow2.f32 %v1167_v22 }
 0x1e7   : > { %v1213_v12 = vpop.f32.mrf.mxu1 }
 0x1e8   : > { %v1007_v25 = vadd.f32 %v1213_v12, %v1172_v60 }
 0x1e9   : > { %v1001_v26 = vpop.f32.mrf.mxu1 }
 0x1ea   : > { %v1176_v1 = vmul.f32 -1.442695, %v1007_v25  ;;  %v1002_v38 = vadd.f32 %v1172_v60, %v1001_v26 }
 0x1ec   : > { %1243 = vpow2.f32 %v1176_v1  ;;  %v1175_v27 = vmul.f32 -1.442695, %v1002_v38 }
 0x1ed   : > { %v1240_v39 = vpop.eup %1239 }
 0x1ee   : > { %v814_v3 = vadd.f32 1.0, %v1240_v39  ;;  %1245 = vpow2.f32 %v1175_v27 }
 0x1ef   : > { %v1242_v30 = vpop.eup %1241 }
 0x1f0   : > { %1247 = vrcp.f32 %v814_v3  ;;  %v813_v31 = vadd.f32 1.0, %v1242_v30 }
 0x1f2   : > { %1249 = vrcp.f32 %v813_v31 }
 0x1f9   : > { %v1244_v4 = vpop.eup %1243 }
 0x1fa   : > { %v1017_v13 = vadd.f32 1.0, %v1244_v4 }
 0x1fb   : > { %v1246_v18 = vpop.eup %1245 }
 0x1fc   : > { %1251 = vrcp.f32 %v1017_v13  ;;  %v1016_v19 = vadd.f32 1.0, %v1246_v18 }
 0x1fd   : > { %v1248_v32 = vpop.eup %1247 }
 0x1fe   : > { %820 = vst.msk [vmem:[%s327_s9 + $0x8] sm:$0xff] %vm366_vm1, %v1248_v32  ;;  %1253 = vrcp.f32 %v1016_v19 }
 0x1ff   : > { %v1250_v20 = vpop.eup %1249 }
 0x200   : > { %819 = vst.msk [vmem:[%s327_s9] sm:$0xff] %vm366_vm1, %v1250_v20 }
 0x209   : > { %v1252_v0 = vpop.eup %1251 }
 0x20a   : > { %1023 = vst.msk [vmem:[%s333_s24 + $0x8] sm:$0xff] %vm366_vm1, %v1252_v0 }
 0x20b   : > { %v1254_v21 = vpop.eup %1253 }
 0x20c   : > { %1022 = vst.msk [vmem:[%s333_s24] sm:$0xff] %vm366_vm1, %v1254_v21 }
 0x20d PF: > { %s18_s26 = sadd.s32 1, %s1277_s26   ;;  %s1598_s24 = smov %s1273_s25 }
 0x20e   : > { %p15_p5 = scmp.ge.s32.totalorder %s18_s26, 4   ;;  %s1599_s25 = smov %s1601_s27 }
 0x210   :  { %17 = sbr.rel (!%p15_p5) target bundleno = 2 (0x2), region = 94 }

</bundles_post_ra>
